<compile_context>
chip_gen: v7x
topology: tpu7x:2x2x1
jax: 0.10.0
libtpu: 0.0.40
codegen_flags: <defaults>
</compile_context>

<pallas_src>
import functools

import jax
import jax.numpy as jnp
from jax.experimental import pallas as pl
from jax.experimental.pallas import tpu as pltpu


SWIN_CHANNELS = [96, 192, 384, 768]
RESNET_LIKE_CHANNELS = [32, 64, 128, 256]
PROJECTION_CHANNELS = 256
FPN_OUT_CHANNELS = 256


# ----------------------------------------------------------------------------
# Hardware-aware knobs
# ----------------------------------------------------------------------------

@functools.lru_cache(maxsize=None)
def _vmem_limit_bytes():
    """Generation-aware scoped-VMEM budget: ~3/4 of physical VMEM, capped at
    96 MiB (=> ~96 MiB on v5e/v6e's 128 MiB, ~48 MiB on v7x's 64 MiB)."""
    cap = 64 * 1024 * 1024
    try:
        info = pltpu.get_tpu_info()
        cap = int(getattr(info, "vmem_capacity_bytes", 0)) or cap
    except Exception:
        pass
    return int(min(cap * 3 // 4, 96 * 1024 * 1024))


@functools.lru_cache(maxsize=None)
def _roll_is_numpy_convention():
    """One-off probe: does pltpu.roll shift elements toward higher indices
    (jnp.roll convention)?  Keeps the 3x3 tap indexing robust either way."""
    def k(x_ref, o_ref):
        o_ref[...] = pltpu.roll(x_ref[...], 1, axis=0)

    x = (jnp.arange(8, dtype=jnp.float32)[:, None]
         * jnp.ones((1, 128), jnp.float32))
    y = pl.pallas_call(k, out_shape=jax.ShapeDtypeStruct((8, 128), jnp.float32))(x)
    return bool(y[1, 0] == 0.0)


def _roll_shift(off, rows):
    """Static shift amount so that rolled[r] == x[(r + off) % rows]."""
    return (-off) % rows if _roll_is_numpy_convention() else off % rows


# ----------------------------------------------------------------------------
# Tile-size helper
# ----------------------------------------------------------------------------

def _choose_tm(m, target=1024):
    """Row tile: divides m, multiple of 16 (bf16 sublane packing) where
    possible, and small enough that the grid exposes >= 2 parallel steps."""
    if m <= 16 or m % 8 != 0:
        return m
    cap = min(target, m // 2)
    for step in (16, 8):
        best = None
        for t in range(step, cap + 1, step):
            if m % t == 0:
                best = t
        if best is not None:
            return best
    return m


# ----------------------------------------------------------------------------
# Plain-JAX glue (pure data movement)
# ----------------------------------------------------------------------------

def space_to_depth(x, r):
    # TODO(synk): fold this into the consuming matmul's BlockSpec/index_map
    # instead of materializing the 6-D transpose in HBM between kernels.
    n, h, w, c = x.shape
    x = x.reshape(n, h // r, r, w // r, r, c)
    x = x.transpose(0, 1, 3, 2, 4, 5)
    return x.reshape(n, h // r, w // r, r * r * c)


# ----------------------------------------------------------------------------
# Backbone stage kernel (fused swin | res 1x1 matmul)
# ----------------------------------------------------------------------------

def _make_stage_kernel(relu_start):
    """One bf16 matmul + bias; ReLU only on the tail (ResNet-like) channels,
    so both synthetic backbones share one lane-dense output tensor."""

    def kernel(x_ref, w_ref, b_ref, o_ref):
        acc = jnp.dot(x_ref[...], w_ref[...], preferred_element_type=jnp.float32)
        acc = acc + b_ref[...]
        if relu_start is not None:
            col = jax.lax.broadcasted_iota(jnp.int32, acc.shape, 1)
            acc = jnp.where(col >= relu_start, jnp.maximum(acc, 0.0), acc)
        o_ref[...] = acc.astype(o_ref.dtype)

    return kernel


def stage_matmul(x, w, b, *, relu_start=None):
    """Tiled fused 1x1 conv (patchify / patch-merge) over NHWC, bf16 out."""
    n, h, ww, cin = x.shape
    m = n * h * ww
    cout = w.shape[1]
    x2 = x.reshape(m, cin)
    tm = _choose_tm(m)

    flops = 2 * m * cin * cout
    bytes_accessed = m * cin * 2 + cin * cout * 2 + cout * 4 + m * cout * 2
    out = pl.pallas_call(
        _make_stage_kernel(relu_start),
        out_shape=jax.ShapeDtypeStruct((m, cout), jnp.bfloat16),
        grid=(m // tm,),
        in_specs=[pl.BlockSpec((tm, cin), lambda i: (i, 0)),
                  pl.BlockSpec((cin, cout), lambda i: (0, 0)),
                  pl.BlockSpec((1, cout), lambda i: (0, 0))],
        out_specs=pl.BlockSpec((tm, cout), lambda i: (i, 0)),
        compiler_params=pltpu.CompilerParams(
            dimension_semantics=("parallel",),
            vmem_limit_bytes=_vmem_limit_bytes()),
        cost_estimate=pl.CostEstimate(flops=int(flops), transcendentals=0,
                                      bytes_accessed=int(bytes_accessed)),
    )(x2, w, b.reshape(1, cout).astype(jnp.float32))
    return out.reshape(n, h, ww, cout)


# ----------------------------------------------------------------------------
# Fused FPN level kernel: lateral 1x1 + top-down add + 3x3 layer block
# ----------------------------------------------------------------------------

def _make_fpn_level_kernel(has_td, H, W):
    def kernel(*refs):
        if has_td:
            x_ref, lw_ref, lb_ref, cw_ref, cb_ref, td_ref, inner_ref, out_ref = refs
        else:
            x_ref, lw_ref, lb_ref, cw_ref, cb_ref, inner_ref, out_ref = refs
            td_ref = None
        rows = x_ref.shape[0]
        hw = H * W
        cout = out_ref.shape[-1]

        # Lateral: concat -> proj 1x1 -> FPN inner 1x1, pre-composed into one
        # bf16 weight; f32 accumulation on the MXU.
        acc = jnp.dot(x_ref[...], lw_ref[...], preferred_element_type=jnp.float32)
        acc = acc + lb_ref[...]
        if has_td:
            # Nearest-2x top-down map (upsampled between kernels as pure data
            # movement): plain VPU add, no MXU FLOPs, no selection operand.
            acc = acc + td_ref[...].astype(jnp.float32)
        inner_ref[...] = acc.astype(inner_ref.dtype)

        # FPN 3x3 "same" layer block on the f32 lateral accumulator: the nine
        # taps are static sublane rolls (XLU) + boundary masks + MXU dots —
        # no padded HBM copy and no second pass over the lateral.
        pos = jax.lax.broadcasted_iota(jnp.int32, (rows, 1), 0) % hw
        hh = pos // W
        wp = pos % W
        h_ok = (hh >= 1, None, hh <= H - 2)
        w_ok = (wp >= 1, None, wp <= W - 2)
        cacc = jnp.zeros((rows, cout), jnp.float32)
        for ky in range(3):
            for kx in range(3):
                off = (ky - 1) * W + (kx - 1)
                xs = acc if off == 0 else pltpu.roll(
                    acc, _roll_shift(off, rows), axis=0)
                xs = xs.astype(jnp.bfloat16)          # single per-tap downcast
                mask = h_ok[ky]
                if w_ok[kx] is not None:
                    mask = (w_ok[kx] if mask is None
                            else jnp.logical_and(mask, w_ok[kx]))
                if mask is not None:                  # mask in bf16 (cheap select)
                    xs = jnp.where(mask, xs, jnp.zeros((), jnp.bfloat16))
                cacc = cacc + jnp.dot(xs, cw_ref[ky, kx],
                                      preferred_element_type=jnp.float32)
        out_ref[...] = cacc + cb_ref[...]

    return kernel


def fpn_level(feat, lat_w, lat_b, conv_w, conv_b, topdown=None):
    """One fused FPN level. Returns (last_inner (m,C) bf16, FPN map (m,C) f32)."""
    n, h, w, cin = feat.shape
    hw = h * w
    m = n * hw
    cout = lat_w.shape[1]
    x2 = feat.reshape(m, cin)

    # The 3x3 taps need whole images per block (no halo), so tile over the
    # batch whenever the per-image row count is sublane-aligned (>= 2 steps).
    # TODO(synk): for large images, tile H with a 1-row halo so a whole image
    # (plus temporaries) never has to fit in VMEM.
    if n > 1 and hw % 8 == 0:
        tm, grid = hw, (n,)
    else:
        tm, grid = m, (1,)

    in_specs = [
        pl.BlockSpec((tm, cin), lambda i: (i, 0)),
        pl.BlockSpec((cin, cout), lambda i: (0, 0)),
        pl.BlockSpec((1, cout), lambda i: (0, 0)),
        pl.BlockSpec((3, 3, cout, cout), lambda i: (0, 0, 0, 0)),
        pl.BlockSpec((1, cout), lambda i: (0, 0)),
    ]
    args = [x2, lat_w, lat_b.reshape(1, cout).astype(jnp.float32),
            conv_w, conv_b.reshape(1, cout).astype(jnp.float32)]
    if topdown is not None:
        in_specs.append(pl.BlockSpec((tm, cout), lambda i: (i, 0)))
        args.append(topdown)

    flops = 2 * m * cin * cout + 2 * m * 9 * cout * cout
    bytes_accessed = (sum(int(a.size) * a.dtype.itemsize for a in args)
                      + m * cout * (2 + 4))
    inner, fpn = pl.pallas_call(
        _make_fpn_level_kernel(topdown is not None, h, w),
        out_shape=(jax.ShapeDtypeStruct((m, cout), jnp.bfloat16),
                   jax.ShapeDtypeStruct((m, cout), jnp.float32)),
        grid=grid,
        in_specs=in_specs,
        out_specs=(pl.BlockSpec((tm, cout), lambda i: (i, 0)),
                   pl.BlockSpec((tm, cout), lambda i: (i, 0))),
        compiler_params=pltpu.CompilerParams(
            dimension_semantics=("parallel",),
            vmem_limit_bytes=_vmem_limit_bytes()),
        cost_estimate=pl.CostEstimate(flops=int(flops), transcendentals=0,
                                      bytes_accessed=int(bytes_accessed)),
    )(*args)
    return inner, fpn


# ----------------------------------------------------------------------------
# Parameter construction (deterministic, synthetic)
# ----------------------------------------------------------------------------

def make_params(key):
    keys = iter(jax.random.split(key, 24))
    bf16 = jnp.bfloat16
    cs, cr = SWIN_CHANNELS, RESNET_LIKE_CHANNELS

    def lin(cin, cout):
        kw, kb = jax.random.split(next(keys))
        w = jax.random.normal(kw, (cin, cout), jnp.float32) / jnp.sqrt(float(cin))
        b = jax.random.normal(kb, (cout,), jnp.float32) * 0.01
        return w, b

    p = {}

    # Stage 0: swin patch-embed (48 -> 96) and res stem (48 -> 32) share the
    # space_to_depth(x, 4) input -> one lane-dense (48 -> 128) fused matmul.
    ws, bs = lin(4 * 4 * 3, cs[0])
    wr, br = lin(4 * 4 * 3, cr[0])
    p["stage0"] = (jnp.concatenate([ws, wr], axis=1).astype(bf16),
                   jnp.concatenate([bs, br], axis=0))

    # Stages 1..3: synthetic patch-merge of BOTH backbones fused into one
    # block-structured matmul reading s2d of the fused [swin | res] feature.
    for i in range(1, 4):
        csp, crp = cs[i - 1], cr[i - 1]
        ci = csp + crp
        ws, bs = lin(4 * csp, cs[i])
        wr, br = lin(4 * crp, cr[i])
        wf = jnp.zeros((4 * ci, cs[i] + cr[i]), jnp.float32)
        for blk in range(4):
            r0 = blk * ci
            wf = wf.at[r0:r0 + csp, :cs[i]].set(ws[blk * csp:(blk + 1) * csp])
            wf = wf.at[r0 + csp:r0 + ci, cs[i]:].set(wr[blk * crp:(blk + 1) * crp])
        p[f"stage{i}"] = (wf.astype(bf16), jnp.concatenate([bs, br], axis=0))

    # FPN laterals: the 1x1 projection conv and the FPN inner 1x1 conv are
    # back-to-back linear maps, pre-composed into one weight; the channel
    # concat over [swin | res] is already the fused backbone feature order.
    for i in range(4):
        wp, bp = lin(cs[i] + cr[i], PROJECTION_CHANNELS)
        wi, bi = lin(PROJECTION_CHANNELS, FPN_OUT_CHANNELS)
        p[f"lateral{i}"] = ((wp @ wi).astype(bf16), bp @ wi + bi)

    # FPN 3x3 layer blocks.
    for i in range(4):
        kw, kb = jax.random.split(next(keys))
        w = (jax.random.normal(kw, (3, 3, FPN_OUT_CHANNELS, FPN_OUT_CHANNELS),
                               jnp.float32) / jnp.sqrt(9.0 * FPN_OUT_CHANNELS))
        b = jax.random.normal(kb, (FPN_OUT_CHANNELS,), jnp.float32) * 0.01
        p[f"fpn{i}"] = (w.astype(bf16), b)
    return p


# ----------------------------------------------------------------------------
# Forward pass (8 pallas_calls total)
# ----------------------------------------------------------------------------

def combined_swin_resnet_fpn_forward(params, x_nchw):
    # NCHW -> NHWC (channels onto the lane axis), bf16 operands for the MXU.
    x = jnp.transpose(x_nchw, (0, 2, 3, 1)).astype(jnp.bfloat16)

    # --- synthetic backbones (one fused [swin | res] matmul per stage) -------
    # TODO(synk): the pretrained Swin-T attention blocks and the torchvision
    # ResNet bottlenecks are not reproduced (no checkpoint loading allowed);
    # deterministic patchify / patch-merge projections stand in.
    feats = []
    f = stage_matmul(space_to_depth(x, 4), *params["stage0"],
                     relu_start=SWIN_CHANNELS[0])
    feats.append(f)
    for i in range(1, 4):
        f = stage_matmul(space_to_depth(f, 2), *params[f"stage{i}"],
                         relu_start=SWIN_CHANNELS[i])
        feats.append(f)
    # Both backbones share strides here, so the reference permute(0, 3, 1, 2)
    # is a layout no-op and the resize branch is never taken.
    # TODO(synk): bilinear-resize branch for mismatched spatial sizes.

    # --- FPN: one fused kernel per level -------------------------------------
    results = [None] * 4
    inner = None
    for idx in (3, 2, 1, 0):
        feat = feats[idx]
        n, h, w, _ = feat.shape
        topdown = None
        if inner is not None:
            # Nearest-2x upsample of the coarser lateral output: pure data
            # movement between kernels (no selection matmul / MXU FLOPs).
            t = inner.reshape(n, h // 2, w // 2, FPN_OUT_CHANNELS)
            t = jnp.repeat(jnp.repeat(t, 2, axis=1), 2, axis=2)
            topdown = t.reshape(n * h * w, FPN_OUT_CHANNELS)
        inner, fpn2d = fpn_level(feat, *params[f"lateral{idx}"],
                                 *params[f"fpn{idx}"], topdown=topdown)
        results[idx] = fpn2d.reshape(n, h, w, FPN_OUT_CHANNELS)

    # NHWC -> NCHW to match the PyTorch return convention (f32 outputs).
    return {str(i): jnp.transpose(results[i], (0, 3, 1, 2)) for i in range(4)}


# ----------------------------------------------------------------------------
# Pure-JAX f32 reference (same synthetic network) for tolerance checks
# ----------------------------------------------------------------------------

def reference_forward(params, x_nchw):
    def stage(x, w, b, relu_start):
        y = jnp.einsum("nhwc,cd->nhwd", x, w.astype(jnp.float32)) + b
        col = jnp.arange(y.shape[-1])
        return jnp.where(col >= relu_start, jnp.maximum(y, 0.0), y)

    def conv3x3(x, w, b):
        n, h, ww, _ = x.shape
        xp = jnp.pad(x, ((0, 0), (1, 1), (1, 1), (0, 0)))
        out = jnp.zeros((n, h, ww, w.shape[-1]), jnp.float32)
        for ky in range(3):
            for kx in range(3):
                out = out + jnp.einsum("nhwc,cd->nhwd",
                                       xp[:, ky:ky + h, kx:kx + ww, :],
                                       w[ky, kx].astype(jnp.float32))
        return out + b

    x = jnp.transpose(x_nchw, (0, 2, 3, 1)).astype(jnp.float32)
    feats = []
    f = stage(space_to_depth(x, 4), *params["stage0"], SWIN_CHANNELS[0])
    feats.append(f)
    for i in range(1, 4):
        f = stage(space_to_depth(f, 2), *params[f"stage{i}"], SWIN_CHANNELS[i])
        feats.append(f)

    results = {}
    inner = None
    for idx in (3, 2, 1, 0):
        lw, lb = params[f"lateral{idx}"]
        lat = jnp.einsum("nhwc,cd->nhwd", feats[idx], lw.astype(jnp.float32)) + lb
        if inner is not None:
            lat = lat + jnp.repeat(jnp.repeat(inner, 2, axis=1), 2, axis=2)
        inner = lat
        cw, cb = params[f"fpn{idx}"]
        results[str(idx)] = jnp.transpose(conv3x3(lat, cw, cb), (0, 3, 1, 2))
    return results


# ----------------------------------------------------------------------------
# Main
# ----------------------------------------------------------------------------

if __name__ == "__main__":
    key = jax.random.PRNGKey(0)
    k_params, k_x = jax.random.split(key)
    params = make_params(k_params)

    # Small NCHW RGB input -> FPN maps at strides 4/8/16/32.
    x = jax.random.normal(k_x, (2, 3, 64, 64), jnp.float32)

    _roll_is_numpy_convention()   # prime the one-off hardware probe
    _vmem_limit_bytes()

    fwd = jax.jit(combined_swin_resnet_fpn_forward)
    out = fwd(params, x)
    out = jax.tree_util.tree_map(jax.block_until_ready, out)

    expected = {"0": (2, 256, 16, 16), "1": (2, 256, 8, 8),
                "2": (2, 256, 4, 4), "3": (2, 256, 2, 2)}
    ref = reference_forward(params, x)
    for k, shp in expected.items():
        assert out[k].shape == shp, (k, out[k].shape)
        assert bool(jnp.all(jnp.isfinite(out[k]))), k
        err = float(jnp.max(jnp.abs(out[k] - ref[k])))
        scale = float(jnp.max(jnp.abs(ref[k]))) + 1.0
        # bf16 operands / activations vs. an f32 reference: loose tolerance.
        assert err <= 0.05 * scale + 0.25, (k, err, scale)

    print("KERNEL_OK")
</pallas_src>

<mosaic_0001>
module attributes {stable_mosaic.version = 11 : i64} {
  func.func @k(%arg0: memref<8x128xf32, #tpu.memory_space<vmem>>, %arg1: memref<8x128xf32, #tpu.memory_space<vmem>>) attributes {dimension_semantics = [], scalar_prefetch = 0 : i64, scratch_operands = 0 : i64, tpu.core_type = #tpu.core_type<tc>} {
    %c0 = arith.constant 0 : index
    %c0_0 = arith.constant 0 : index
    %0 = vector.load %arg0[%c0, %c0_0] : memref<8x128xf32, #tpu.memory_space<vmem>>, vector<8x128xf32>
    %c1_i32 = arith.constant 1 : i32
    %1 = tpu.dynamic_rotate %0 by %c1_i32 dim 0 : vector<8x128xf32>, i32 -> vector<8x128xf32>
    %c0_1 = arith.constant 0 : index
    %c0_2 = arith.constant 0 : index
    %2 = vector.load %arg1[%c0_1, %c0_2] : memref<8x128xf32, #tpu.memory_space<vmem>>, vector<8x128xf32>
    tpu.vector_store %arg1[%c0_1, %c0_2], %1 {strides = array<i32>} : memref<8x128xf32, #tpu.memory_space<vmem>>, vector<8x128xf32>,
    return
  }
}

</mosaic_0001>

<bundles_post_ra>
// kernel: tpu_custom_call.1
= control target key start
LH: loop header
LB: loop body
LE: loop exit
PB: predicated region body
PF: predicated region fallthrough
CT: control target
= control target key end

     0   :  { %6 = vsyncpa [#allocation3], 0  ;;  %s125_s0 = inlined_call_operand.hbm [shape: f32[8,128], index: 0, kind: input, shape index: {}]   ;;  %s126_s1 = inlined_call_operand.hbm [shape: f32[8,128], index: 1, kind: output, shape index: {}]  }
   0x1   :  { %7 = vsyncpa [#allocation4], 0  ;;  %s89_s6 = smov [#allocation2]   ;;  %s41_s10 = scalar_lea.hbm %s125_s0, 128 }
   0x2   :  { %s14_s7 = sshll.u32 %s89_s6, 4  ;;  %p42_p0 = scmp.ne.s32.totalorder %s125_s0, %s41_s10  ;;  %s15_s7 = int_to_ptr.vmem [resolvable:$true] %s14_s7 }
   0x3   :  { %p45_p1 = scmp.lt.u32.totalorder %s41_s10, %s125_s0 }
   0x5   :  { %p47_p2 = pnand %p45_p1, %p42_p0 }
   0x7   :  { %50 = shalt.err (!%p47_p2)
}
   0x8   :  { %s51_s15 = scalar_lea.vmem %s15_s7, 128  ;;  %p56_p4 = scmp.lt.s32.totalorder %s15_s7, %s15_s7 }
   0x9   :  { %p52_p3 = scmp.ne.s32.totalorder %s15_s7, %s51_s15  ;;  %p57_p5 = scmp.lt.s32.totalorder %s51_s15, %s51_s15 }
   0xb   :  { %p58_p6 = por %p57_p5, %p56_p4 }
   0xd   :  { %p59_p7 = pnand %p58_p6, %p52_p3 }
   0xf   :  { %62 = shalt.err (!%p59_p7)
}
  0x10   :  { %17 = dma.hbm_to_vmem [thread:$0]  %s125_s0, 128, %s15_s7, [#allocation3]  }
  0x11   :  { %85 = dma.done.wait [#allocation3], 128  }
  0x12   :  { %86 = vsyncadd [#allocation3], 4294967168  ;;  %s90_s18 = smov [#allocation5]   ;;  %v21_v0 = vld [vmem:[#allocation2] sm:$0xff] }
  0x13   :  { %s30_s19 = sshll.u32 %s90_s18, 4  ;;  %v22_v1 = vrot.slane %v21_v0, 7  ;;  %s31_s19 = int_to_ptr.vmem [resolvable:$true] %s30_s19 }
  0x14   :  { %s63_s20 = scalar_lea.vmem %s31_s19, 128  ;;  %p68_p9 = scmp.lt.s32.totalorder %s31_s19, %s31_s19 }
  0x15   :  { %23 = vst [vmem:[#allocation5] sm:$0xff] %v22_v1  ;;  %p64_p8 = scmp.ne.s32.totalorder %s31_s19, %s63_s20  ;;  %p69_p10 = scmp.lt.s32.totalorder %s63_s20, %s63_s20 }
  0x17   :  { %p70_p11 = por %p69_p10, %p68_p9 }
  0x19   :  { %p71_p12 = pnand %p70_p11, %p64_p8 }
  0x1b   :  { %74 = shalt.err (!%p71_p12)
}
  0x1c   :  { %s75_s23 = scalar_lea.hbm %s126_s1, 128 }
  0x1d   :  { %p76_p13 = scmp.ne.s32.totalorder %s126_s1, %s75_s23  ;;  %p79_p0 = scmp.lt.u32.totalorder %s75_s23, %s126_s1 }
  0x1f   :  { %p81_p1 = pnand %p79_p0, %p76_p13 }
  0x21   :  { %84 = shalt.err (!%p81_p1)
}
  0x22   :  { %33 = dma.vmem_to_hbm [thread:$0]  %s31_s19, 128, %s126_s1, [#allocation4]  }
  0x23   :  { %87 = dma.done.wait [#allocation4], 128  }
  0x24   :  { %88 = vsyncadd [#allocation4], 4294967168 }
  0x25   :  { %37 = vsyncpa [#allocation3], 1 }
  0x26   :  { %38 = vsyncpa [#allocation4], 1 }

</bundles_post_ra>
